<compile_context>
chip_gen: v5e
topology: v5e:2x2
jax: 0.10.0
libtpu: 0.0.40
codegen_flags: <defaults>
</compile_context>

<pallas_src>
from functools import partial

import jax
import jax.numpy as jnp
from jax import lax
from jax.experimental import pallas as pl
from jax.experimental.pallas import tpu as pltpu


LANE = 128
SUBLANE = 8


def _round_up(x, m):
    return ((x + m - 1) // m) * m


def _project_inner_kernel(adv_ref, ori_ref, nrm_ref, out_ref, *, approx, row_chunk):
    # Block layout: (3, tile_rows, 128); ref[c] is a dense (tile_rows, 128)
    # coordinate plane.  Process the block in static row chunks so each
    # chunk's ~20 temporaries stay bounded (vreg file / spill scratch).
    tile_rows = adv_ref.shape[1]
    step = min(tile_rows, _round_up(max(int(row_chunk), 1), SUBLANE))

    for r0 in range(0, tile_rows, step):
        rc = min(step, tile_rows - r0)
        sl = slice(r0, r0 + rc)

        ax = adv_ref[0, sl, :].astype(jnp.float32)
        ay = adv_ref[1, sl, :].astype(jnp.float32)
        az = adv_ref[2, sl, :].astype(jnp.float32)
        ox = ori_ref[0, sl, :].astype(jnp.float32)
        oy = ori_ref[1, sl, :].astype(jnp.float32)
        oz = ori_ref[2, sl, :].astype(jnp.float32)
        nx = nrm_ref[0, sl, :].astype(jnp.float32)
        ny = nrm_ref[1, sl, :].astype(jnp.float32)
        nz = nrm_ref[2, sl, :].astype(jnp.float32)

        dx = ax - ox
        dy = ay - oy
        dz = az - oz

        # inner_diff_normal = <diff, normal>; inner_mask = inner_diff_normal < 0
        nd = dx * nx + dy * ny + dz * nz
        inner = nd < 0.0

        # vng = cross(normal, diff); only its squared norm is needed
        # (vng_norm < 1e-6  <=>  vng_sq < 1e-12, sqrt dropped).
        vngx = ny * dz - nz * dy
        vngy = nz * dx - nx * dz
        vngz = nx * dy - ny * dx
        vng_sq = vngx * vngx + vngy * vngy + vngz * vngz

        if approx:
            # Lagrange form, reusing <n,d>:
            #   vref     = cross(vng, n) = d*|n|^2 - n*<n,d>
            #   |vref|^2 = |n|^2 * |vng|^2
            #   1/(|vref| + 1e-9) ~= rsqrt(|vref|^2 + 1e-18)   (single EUP op)
            nn = nx * nx + ny * ny + nz * nz
            vrefx = dx * nn - nx * nd
            vrefy = dy * nn - ny * nd
            vrefz = dz * nn - nz * nd
            inv = lax.rsqrt(nn * vng_sq + 1e-18)
        else:
            # Exact cross(cross()) form: rounding parity with the torch code.
            vrefx = vngy * nz - vngz * ny
            vrefy = vngz * nx - vngx * nz
            vrefz = vngx * ny - vngy * nx
            vref_norm = jnp.sqrt(vrefx * vrefx + vrefy * vrefy + vrefz * vrefz)
            inv = 1.0 / (vref_norm + 1e-9)

        # diff_proj = diff * vref / (vref_norm + 1e-9)   (elementwise, as in torch)
        px = dx * vrefx * inv
        py = dy * vrefy * inv
        pz = dz * vrefz * inv

        # opposite_mask = inner & (vng_norm < 1e-6)  ->  zero diff_proj there
        opposite = inner & (vng_sq < 1e-12)
        px = jnp.where(opposite, 0.0, px)
        py = jnp.where(opposite, 0.0, py)
        pz = jnp.where(opposite, 0.0, pz)

        # diff[inner] = diff_proj[inner];  adv = ori + diff
        # (padded tail points are all-zero inputs -> inner=False -> output 0).
        out_ref[0, sl, :] = (ox + jnp.where(inner, px, dx)).astype(out_ref.dtype)
        out_ref[1, sl, :] = (oy + jnp.where(inner, py, dy)).astype(out_ref.dtype)
        out_ref[2, sl, :] = (oz + jnp.where(inner, pz, dz)).astype(out_ref.dtype)


def _choose_tiling(n_points, max_tile_rows, min_grid_steps):
    """Rows of 128 lane-packed points, grid-step count, and per-step tile rows.

    Padding is bounded by ~7 rows per grid step (not tile_rows-1), and the
    grid has at least `min_grid_steps` (even) steps whenever there are >= 16
    rows, so both v7x TensorCores always get work.
    """
    rows = max(pl.cdiv(n_points, LANE), SUBLANE)
    rows = _round_up(rows, SUBLANE)

    steps = pl.cdiv(rows, max_tile_rows)
    if rows >= min_grid_steps * SUBLANE:
        steps = max(steps, min_grid_steps)
    if steps > 1:
        steps = _round_up(steps, 2)          # balanced 2-TensorCore split

    tile_rows = _round_up(pl.cdiv(rows, steps), SUBLANE)
    steps = pl.cdiv(rows, tile_rows)
    padded_rows = steps * tile_rows
    return padded_rows, tile_rows, steps


def project_inner_points_planar(adv_p, ori_p, nrm_p, *,
                                approx_reciprocal=False,
                                max_tile_rows=1024,
                                row_chunk=64,
                                min_grid_steps=2,
                                dimension_semantics=None):
    """ProjectInnerPoints on coordinate-planar [3, N] inputs (preferred entry).

    Feeding planar data avoids the [B,K,3]<->[3,N] relayout entirely; when N is
    a multiple of 1024 the blocking below is a pure metadata reshape.

    Args:
        adv_p, ori_p, nrm_p: [3, N] float arrays (x/y/z planes).
        approx_reciprocal: False (default) = exact torch-parity divide;
            True = EUP rsqrt + Lagrange vref fast path (v7x VALU relief).
        dimension_semantics: None -> ("parallel",).  On v7x pass
            (pltpu.CORE_PARALLEL,) to force an explicit 2-TensorCore split.
    Returns:
        [3, N] array of the same dtype.
    """
    C, N = adv_p.shape
    assert C == 3
    dtype = adv_p.dtype

    rows, tile_rows, steps = _choose_tiling(N, max_tile_rows, min_grid_steps)
    n_pad = rows * LANE

    def to_blocks(x):
        if n_pad != N:
            x = jnp.pad(x, ((0, 0), (0, n_pad - N)))   # lane-axis tail pad only
        return x.reshape(3, rows, LANE)                 # free row-major reshape

    if dimension_semantics is None:
        dimension_semantics = ("parallel",)

    spec = pl.BlockSpec((3, tile_rows, LANE), lambda i: (0, i, 0))
    out_p = pl.pallas_call(
        partial(_project_inner_kernel,
                approx=approx_reciprocal, row_chunk=row_chunk),
        out_shape=jax.ShapeDtypeStruct((3, rows, LANE), dtype),
        grid=(steps,),
        in_specs=[spec, spec, spec],
        out_specs=spec,
        compiler_params=pltpu.CompilerParams(
            dimension_semantics=tuple(dimension_semantics)),
    )(to_blocks(adv_p), to_blocks(ori_p), to_blocks(nrm_p))

    out = out_p.reshape(3, n_pad)
    if n_pad != N:
        out = out[:, :N]
    return out


def project_inner_points(adv_pcs, ori_pcs, normal=None, **kwargs):
    """Drop-in for ProjectInnerPoints.forward on [B, K, 3] point clouds.

    NOTE: the interleaved [B, K, 3] API forces one [N,3]<->[3,N] relayout per
    tensor around the kernel (roughly 2-3x the kernel's own HBM traffic).
    Callers that can keep their clouds coordinate-planar should call
    project_inner_points_planar() directly and skip it.
    # TODO(synk): remove this relayout once upstream stores clouds as [3, N].
    """
    if normal is None:
        return adv_pcs
    B, K, C = adv_pcs.shape
    assert C == 3
    N = B * K

    def to_planar(x):
        return jnp.transpose(x.reshape(N, 3), (1, 0))

    out_p = project_inner_points_planar(
        to_planar(adv_pcs), to_planar(ori_pcs), to_planar(normal), **kwargs)
    return jnp.transpose(out_p, (1, 0)).reshape(B, K, 3)


def _reference(adv_pcs, ori_pcs, normal):
    """Pure-JAX reference mirroring the torch code (for sanity check)."""
    diff = adv_pcs - ori_pcs
    inner = jnp.sum(diff * normal, axis=-1) < 0.0
    vng = jnp.cross(normal, diff)
    vng_norm = jnp.linalg.norm(vng, axis=-1)
    vref = jnp.cross(vng, normal)
    vref_norm = jnp.linalg.norm(vref, axis=-1)
    diff_proj = diff * vref / (vref_norm[..., None] + 1e-9)
    opposite = inner & (vng_norm < 1e-6)
    diff_proj = jnp.where(opposite[..., None], 0.0, diff_proj)
    new_diff = jnp.where(inner[..., None], diff_proj, diff)
    return ori_pcs + new_diff


def _make_inputs(key, B, K):
    k1, k2, k3 = jax.random.split(key, 3)
    ori = jax.random.normal(k1, (B, K, 3), dtype=jnp.float32)
    adv = ori + 0.1 * jax.random.normal(k2, (B, K, 3), dtype=jnp.float32)
    nrm = jax.random.normal(k3, (B, K, 3), dtype=jnp.float32)
    nrm = nrm / (jnp.linalg.norm(nrm, axis=-1, keepdims=True) + 1e-9)
    return adv, ori, nrm


if __name__ == "__main__":
    key = jax.random.PRNGKey(0)

    # [B, K, 3] point clouds (shape implied by the torch module).
    B, K = 2, 256
    adv, ori, nrm = _make_inputs(key, B, K)
    ref = _reference(adv, ori, nrm)

    # Default path: exact torch-parity divide.
    out = jax.block_until_ready(project_inner_points(adv, ori, nrm))
    assert out.shape == (B, K, 3)
    assert jnp.allclose(out, ref, atol=1e-5, rtol=1e-5)

    # Opt-in fast path (EUP rsqrt + Lagrange vref).
    out_fast = jax.block_until_ready(
        project_inner_points(adv, ori, nrm, approx_reciprocal=True))
    assert jnp.allclose(out_fast, ref, atol=1e-3, rtol=1e-3)

    # Ragged shape (B*K not a multiple of 128): exercises lane-tail padding.
    B2, K2 = 3, 100
    adv2, ori2, nrm2 = _make_inputs(jax.random.PRNGKey(1), B2, K2)
    out2 = jax.block_until_ready(project_inner_points(adv2, ori2, nrm2))
    assert jnp.allclose(out2, _reference(adv2, ori2, nrm2), atol=1e-5, rtol=1e-5)

    # Multi-step grid + in-kernel row chunking (still tiny: 8192 points).
    B3, K3 = 4, 2048
    adv3, ori3, nrm3 = _make_inputs(jax.random.PRNGKey(2), B3, K3)
    ref3 = _reference(adv3, ori3, nrm3)
    out3 = jax.block_until_ready(
        project_inner_points(adv3, ori3, nrm3, row_chunk=8))
    assert jnp.allclose(out3, ref3, atol=1e-5, rtol=1e-5)

    # Preferred planar entry point ([3, N] coordinate planes, no relayout,
    # N a multiple of 1024 -> blocking is a pure reshape).
    def flat_planar(x):
        return jnp.transpose(x.reshape(-1, 3), (1, 0))

    out3_p = jax.block_until_ready(
        project_inner_points_planar(flat_planar(adv3), flat_planar(ori3),
                                    flat_planar(nrm3)))
    assert out3_p.shape == (3, B3 * K3)
    assert jnp.allclose(out3_p, flat_planar(ref3), atol=1e-5, rtol=1e-5)

    # Optional v7x knob: explicit 2-TensorCore grid split.  Falls back cleanly
    # where core_parallel lowering is not supported on the local chip.
    try:
        out_cp = jax.block_until_ready(
            project_inner_points(adv3, ori3, nrm3,
                                 dimension_semantics=(pltpu.CORE_PARALLEL,)))
        assert jnp.allclose(out_cp, ref3, atol=1e-5, rtol=1e-5)
    except Exception:
        pass  # TODO(synk): make CORE_PARALLEL the v7x default once verified there.

    # normal=None path: identity.
    assert jnp.array_equal(project_inner_points(adv, ori, None), adv)

    print("KERNEL_OK")
</pallas_src>

<mosaic_0001>
module attributes {stable_mosaic.version = 11 : i64} {
  func.func @_project_inner_kernel(%arg0: i32, %arg1: memref<3x8x128xf32, #tpu.memory_space<vmem>>, %arg2: memref<3x8x128xf32, #tpu.memory_space<vmem>>, %arg3: memref<3x8x128xf32, #tpu.memory_space<vmem>>, %arg4: memref<3x8x128xf32, #tpu.memory_space<vmem>>) attributes {dimension_semantics = [#tpu.dimension_semantics<parallel>], iteration_bounds = array<i64: 1>, scalar_prefetch = 0 : i64, scratch_operands = 0 : i64, tpu.core_type = #tpu.core_type<tc>, window_params = [{transform_indices = @transform_0, window_bounds = array<i64: 3, 8, 128>}, {transform_indices = @transform_1, window_bounds = array<i64: 3, 8, 128>}, {transform_indices = @transform_2, window_bounds = array<i64: 3, 8, 128>}, {transform_indices = @transform_3, window_bounds = array<i64: 3, 8, 128>}]} {
    %c0 = arith.constant 0 : index
    %c0_0 = arith.constant 0 : index
    %c0_1 = arith.constant 0 : index
    %0 = vector.load %arg1[%c0, %c0_0, %c0_1] : memref<3x8x128xf32, #tpu.memory_space<vmem>>, vector<1x8x128xf32>
    %1 = vector.shape_cast %0 : vector<1x8x128xf32> to vector<8x128xf32>
    %c1 = arith.constant 1 : index
    %c0_2 = arith.constant 0 : index
    %c0_3 = arith.constant 0 : index
    %2 = vector.load %arg1[%c1, %c0_2, %c0_3] : memref<3x8x128xf32, #tpu.memory_space<vmem>>, vector<1x8x128xf32>
    %3 = vector.shape_cast %2 : vector<1x8x128xf32> to vector<8x128xf32>
    %c2 = arith.constant 2 : index
    %c0_4 = arith.constant 0 : index
    %c0_5 = arith.constant 0 : index
    %4 = vector.load %arg1[%c2, %c0_4, %c0_5] : memref<3x8x128xf32, #tpu.memory_space<vmem>>, vector<1x8x128xf32>
    %5 = vector.shape_cast %4 : vector<1x8x128xf32> to vector<8x128xf32>
    %c0_6 = arith.constant 0 : index
    %c0_7 = arith.constant 0 : index
    %c0_8 = arith.constant 0 : index
    %6 = vector.load %arg2[%c0_6, %c0_7, %c0_8] : memref<3x8x128xf32, #tpu.memory_space<vmem>>, vector<1x8x128xf32>
    %7 = vector.shape_cast %6 : vector<1x8x128xf32> to vector<8x128xf32>
    %c1_9 = arith.constant 1 : index
    %c0_10 = arith.constant 0 : index
    %c0_11 = arith.constant 0 : index
    %8 = vector.load %arg2[%c1_9, %c0_10, %c0_11] : memref<3x8x128xf32, #tpu.memory_space<vmem>>, vector<1x8x128xf32>
    %9 = vector.shape_cast %8 : vector<1x8x128xf32> to vector<8x128xf32>
    %c2_12 = arith.constant 2 : index
    %c0_13 = arith.constant 0 : index
    %c0_14 = arith.constant 0 : index
    %10 = vector.load %arg2[%c2_12, %c0_13, %c0_14] : memref<3x8x128xf32, #tpu.memory_space<vmem>>, vector<1x8x128xf32>
    %11 = vector.shape_cast %10 : vector<1x8x128xf32> to vector<8x128xf32>
    %c0_15 = arith.constant 0 : index
    %c0_16 = arith.constant 0 : index
    %c0_17 = arith.constant 0 : index
    %12 = vector.load %arg3[%c0_15, %c0_16, %c0_17] : memref<3x8x128xf32, #tpu.memory_space<vmem>>, vector<1x8x128xf32>
    %13 = vector.shape_cast %12 : vector<1x8x128xf32> to vector<8x128xf32>
    %c1_18 = arith.constant 1 : index
    %c0_19 = arith.constant 0 : index
    %c0_20 = arith.constant 0 : index
    %14 = vector.load %arg3[%c1_18, %c0_19, %c0_20] : memref<3x8x128xf32, #tpu.memory_space<vmem>>, vector<1x8x128xf32>
    %15 = vector.shape_cast %14 : vector<1x8x128xf32> to vector<8x128xf32>
    %c2_21 = arith.constant 2 : index
    %c0_22 = arith.constant 0 : index
    %c0_23 = arith.constant 0 : index
    %16 = vector.load %arg3[%c2_21, %c0_22, %c0_23] : memref<3x8x128xf32, #tpu.memory_space<vmem>>, vector<1x8x128xf32>
    %17 = vector.shape_cast %16 : vector<1x8x128xf32> to vector<8x128xf32>
    %18 = arith.subf %1, %7 : vector<8x128xf32>
    %19 = arith.subf %3, %9 : vector<8x128xf32>
    %20 = arith.subf %5, %11 : vector<8x128xf32>
    %21 = arith.mulf %18, %13 : vector<8x128xf32>
    %22 = arith.mulf %19, %15 : vector<8x128xf32>
    %23 = arith.addf %21, %22 : vector<8x128xf32>
    %24 = arith.mulf %20, %17 : vector<8x128xf32>
    %25 = arith.addf %23, %24 : vector<8x128xf32>
    %cst = arith.constant 0.000000e+00 : f32
    %26 = vector.broadcast %cst : f32 to vector<8x128xf32>
    %27 = arith.cmpf olt, %25, %26 : vector<8x128xf32>
    %28 = arith.mulf %15, %20 : vector<8x128xf32>
    %29 = arith.mulf %17, %19 : vector<8x128xf32>
    %30 = arith.subf %28, %29 : vector<8x128xf32>
    %31 = arith.mulf %17, %18 : vector<8x128xf32>
    %32 = arith.mulf %13, %20 : vector<8x128xf32>
    %33 = arith.subf %31, %32 : vector<8x128xf32>
    %34 = arith.mulf %13, %19 : vector<8x128xf32>
    %35 = arith.mulf %15, %18 : vector<8x128xf32>
    %36 = arith.subf %34, %35 : vector<8x128xf32>
    %37 = arith.mulf %30, %30 : vector<8x128xf32>
    %38 = arith.mulf %33, %33 : vector<8x128xf32>
    %39 = arith.addf %37, %38 : vector<8x128xf32>
    %40 = arith.mulf %36, %36 : vector<8x128xf32>
    %41 = arith.addf %39, %40 : vector<8x128xf32>
    %42 = arith.mulf %33, %17 : vector<8x128xf32>
    %43 = arith.mulf %36, %15 : vector<8x128xf32>
    %44 = arith.subf %42, %43 : vector<8x128xf32>
    %45 = arith.mulf %36, %13 : vector<8x128xf32>
    %46 = arith.mulf %30, %17 : vector<8x128xf32>
    %47 = arith.subf %45, %46 : vector<8x128xf32>
    %48 = arith.mulf %30, %15 : vector<8x128xf32>
    %49 = arith.mulf %33, %13 : vector<8x128xf32>
    %50 = arith.subf %48, %49 : vector<8x128xf32>
    %51 = arith.mulf %44, %44 : vector<8x128xf32>
    %52 = arith.mulf %47, %47 : vector<8x128xf32>
    %53 = arith.addf %51, %52 : vector<8x128xf32>
    %54 = arith.mulf %50, %50 : vector<8x128xf32>
    %55 = arith.addf %53, %54 : vector<8x128xf32>
    %56 = math.sqrt %55 : vector<8x128xf32>
    %cst_24 = arith.constant 9.99999971E-10 : f32
    %57 = vector.broadcast %cst_24 : f32 to vector<8x128xf32>
    %58 = arith.addf %56, %57 : vector<8x128xf32>
    %cst_25 = arith.constant 1.000000e+00 : f32
    %59 = vector.broadcast %cst_25 : f32 to vector<8x128xf32>
    %60 = arith.divf %59, %58 : vector<8x128xf32>
    %61 = arith.mulf %18, %44 : vector<8x128xf32>
    %62 = arith.mulf %61, %60 : vector<8x128xf32>
    %63 = arith.mulf %19, %47 : vector<8x128xf32>
    %64 = arith.mulf %63, %60 : vector<8x128xf32>
    %65 = arith.mulf %20, %50 : vector<8x128xf32>
    %66 = arith.mulf %65, %60 : vector<8x128xf32>
    %cst_26 = arith.constant 9.99999996E-13 : f32
    %67 = vector.broadcast %cst_26 : f32 to vector<8x128xf32>
    %68 = arith.cmpf olt, %41, %67 : vector<8x128xf32>
    %69 = arith.andi %27, %68 : vector<8x128xi1>
    %cst_27 = arith.constant 0.000000e+00 : f32
    %70 = vector.broadcast %cst_27 : f32 to vector<8x128xf32>
    %71 = arith.select %69, %70, %62 : vector<8x128xi1>, vector<8x128xf32>
    %cst_28 = arith.constant 0.000000e+00 : f32
    %72 = vector.broadcast %cst_28 : f32 to vector<8x128xf32>
    %73 = arith.select %69, %72, %64 : vector<8x128xi1>, vector<8x128xf32>
    %cst_29 = arith.constant 0.000000e+00 : f32
    %74 = vector.broadcast %cst_29 : f32 to vector<8x128xf32>
    %75 = arith.select %69, %74, %66 : vector<8x128xi1>, vector<8x128xf32>
    %76 = arith.select %27, %71, %18 : vector<8x128xi1>, vector<8x128xf32>
    %77 = arith.addf %7, %76 : vector<8x128xf32>
    %c0_30 = arith.constant 0 : index
    %c0_31 = arith.constant 0 : index
    %c0_32 = arith.constant 0 : index
    %78 = vector.load %arg4[%c0_30, %c0_31, %c0_32] : memref<3x8x128xf32, #tpu.memory_space<vmem>>, vector<1x8x128xf32>
    %79 = vector.shape_cast %78 : vector<1x8x128xf32> to vector<8x128xf32>
    %80 = vector.shape_cast %77 : vector<8x128xf32> to vector<1x8x128xf32>
    tpu.vector_store %arg4[%c0_30, %c0_31, %c0_32], %80 {strides = array<i32>} : memref<3x8x128xf32, #tpu.memory_space<vmem>>, vector<1x8x128xf32>,
    %81 = arith.select %27, %73, %19 : vector<8x128xi1>, vector<8x128xf32>
    %82 = arith.addf %9, %81 : vector<8x128xf32>
    %c1_33 = arith.constant 1 : index
    %c0_34 = arith.constant 0 : index
    %c0_35 = arith.constant 0 : index
    %83 = vector.load %arg4[%c1_33, %c0_34, %c0_35] : memref<3x8x128xf32, #tpu.memory_space<vmem>>, vector<1x8x128xf32>
    %84 = vector.shape_cast %83 : vector<1x8x128xf32> to vector<8x128xf32>
    %85 = vector.shape_cast %82 : vector<8x128xf32> to vector<1x8x128xf32>
    tpu.vector_store %arg4[%c1_33, %c0_34, %c0_35], %85 {strides = array<i32>} : memref<3x8x128xf32, #tpu.memory_space<vmem>>, vector<1x8x128xf32>,
    %86 = arith.select %27, %75, %20 : vector<8x128xi1>, vector<8x128xf32>
    %87 = arith.addf %11, %86 : vector<8x128xf32>
    %c2_36 = arith.constant 2 : index
    %c0_37 = arith.constant 0 : index
    %c0_38 = arith.constant 0 : index
    %88 = vector.load %arg4[%c2_36, %c0_37, %c0_38] : memref<3x8x128xf32, #tpu.memory_space<vmem>>, vector<1x8x128xf32>
    %89 = vector.shape_cast %88 : vector<1x8x128xf32> to vector<8x128xf32>
    %90 = vector.shape_cast %87 : vector<8x128xf32> to vector<1x8x128xf32>
    tpu.vector_store %arg4[%c2_36, %c0_37, %c0_38], %90 {strides = array<i32>} : memref<3x8x128xf32, #tpu.memory_space<vmem>>, vector<1x8x128xf32>,
    return
  }
  func.func @transform_0(%arg0: i32) -> (i32, i32, i32) {
    %c0_i32 = arith.constant 0 : i32
    %c0_i32_0 = arith.constant 0 : i32
    %c0_i32_1 = arith.constant 0 : i32
    return %c0_i32, %arg0, %c0_i32_0 : i32, i32, i32
  }
  func.func @transform_1(%arg0: i32) -> (i32, i32, i32) {
    %c0_i32 = arith.constant 0 : i32
    %c0_i32_0 = arith.constant 0 : i32
    %c0_i32_1 = arith.constant 0 : i32
    return %c0_i32, %arg0, %c0_i32_0 : i32, i32, i32
  }
  func.func @transform_2(%arg0: i32) -> (i32, i32, i32) {
    %c0_i32 = arith.constant 0 : i32
    %c0_i32_0 = arith.constant 0 : i32
    %c0_i32_1 = arith.constant 0 : i32
    return %c0_i32, %arg0, %c0_i32_0 : i32, i32, i32
  }
  func.func @transform_3(%arg0: i32) -> (i32, i32, i32) {
    %c0_i32 = arith.constant 0 : i32
    %c0_i32_0 = arith.constant 0 : i32
    %c0_i32_1 = arith.constant 0 : i32
    return %c0_i32, %arg0, %c0_i32_0 : i32, i32, i32
  }
}

</mosaic_0001>

<bundles_post_ra>
// kernel: tpu_custom_call.1
= control target key start
LH: loop header
LB: loop body
LE: loop exit
PB: predicated region body
PF: predicated region fallthrough
CT: control target
= control target key end

     0   :  { %8 = vsyncpa [#allocation3], 0  ;;  %s383_s0 = inlined_call_operand.hbm [shape: f32[3,8,128], index: 0, kind: input, shape index: {}]   ;;  %s384_s1 = inlined_call_operand.hbm [shape: f32[3,8,128], index: 1, kind: input, shape index: {}]   ;;  %s385_s2 = inlined_call_operand.hbm [shape: f32[3,8,128], index: 2, kind: input, shape index: {}]   ;;  %s386_s3 = inlined_call_operand.hbm [shape: f32[3,8,128], index: 3, kind: output, shape index: {}]  }
   0x1   :  { %9 = vsyncpa [#allocation6], 0 }
   0x2   :  { %10 = vsyncpa [#allocation4], 0  ;;  %s28_s14 = sshll.u32 %s384_s1, 4  ;;  %s296_s15 = smov [#allocation5]   ;;  %s29_s14 = int_to_ptr.hbm [resolvable:$true] %s28_s14 }
   0x3   :  { %s30_s16 = sshll.u32 %s296_s15, 4  ;;  %s15_s19 = sshll.u32 %s383_s0, 4  ;;  %s31_s16 = int_to_ptr.vmem [resolvable:$true] %s30_s16  ;;  %s16_s19 = int_to_ptr.hbm [resolvable:$true] %s15_s19 }
   0x4   :  { %s297_s20 = smov 128   ;;  %s298_s21 = smov 8  }
   0x5   :  { %36 = dma.hbm_to_vmem [thread:$0]  %s29_s14, 384, %s31_s16, [#allocation6], %s297_s20, %s297_s20, %s298_s21  }
   0x6   :  { %s299_s22 = smov [#allocation2]   ;;  %s41_s1 = sshll.u32 %s385_s2, 4  ;;  %s42_s1 = int_to_ptr.hbm [resolvable:$true] %s41_s1 }
   0x7   :  { %s17_s23 = sshll.u32 %s299_s22, 4  ;;  %s300_s0 = smov [#allocation7]   ;;  %s18_s23 = int_to_ptr.vmem [resolvable:$true] %s17_s23 }
   0x8   :  { %23 = dma.hbm_to_vmem [thread:$0]  %s16_s19, 384, %s18_s23, [#allocation3], %s297_s20, %s297_s20, %s298_s21  }
   0x9   :  { %s43_s26 = sshll.u32 %s300_s0, 4  ;;  %s44_s26 = int_to_ptr.vmem [resolvable:$true] %s43_s26 }
   0xa   :  { %49 = dma.hbm_to_vmem [thread:$0]  %s42_s1, 384, %s44_s26, [#allocation6], %s297_s20, %s297_s20, %s298_s21  }
   0xb   :  { %290 = dma.done.wait [#allocation3], 384  }
   0xc   :  { %291 = vsyncadd [#allocation3], 4294966912 }
   0xd   :  { %292 = dma.done.wait [#allocation6], 768  }
   0xe   :  { %293 = vsyncadd [#allocation6], 4294966528  ;;  %v62_v0 = vld [vmem:[#allocation2] sm:$0xff]  ;;  %v64_v1 = vld [vmem:[#allocation2 + $0x8] sm:$0xff]  ;;  %s301_s2 = smov [#allocation8]   ;;  %s170_s30 = sshll.u32 %s386_s3, 4  ;;  %s171_s30 = int_to_ptr.hbm [resolvable:$true] %s170_s30 }
   0xf   :  { %v66_v2 = vld [vmem:[#allocation2 + $0x10] sm:$0xff]  ;;  %v340_v3 = vld [vmem:[#allocation5] sm:$0xff]  ;;  %v342_v4 = vld [vmem:[#allocation5 + $0x8] sm:$0xff]  ;;  %s168_s27 = sshll.u32 %s301_s2, 4  ;;  %s169_s27 = int_to_ptr.vmem [resolvable:$true] %s168_s27 }
  0x10   :  { %v344_v5 = vld [vmem:[#allocation5 + $0x10] sm:$0xff]  ;;  %v72_v6 = vld [vmem:[#allocation7] sm:$0xff]  ;;  %v74_v7 = vld [vmem:[#allocation7 + $0x8] sm:$0xff]  ;;  %v347_v9 = vsub.f32 %v62_v0, %v340_v3  ;;  %v350_v10 = vsub.f32 %v64_v1, %v342_v4 }
  0x11   :  { %v76_v8 = vld [vmem:[#allocation7 + $0x10] sm:$0xff]  ;;  %v353_v11 = vsub.f32 %v66_v2, %v344_v5 }
  0x12   :  { %v87_v13 = vmul.f32 %v350_v10, %v76_v8  ;;  %v89_v14 = vmul.f32 %v347_v9, %v76_v8  ;;  %v92_v16 = vmul.f32 %v350_v10, %v72_v6  ;;  %v93_v17 = vmul.f32 %v347_v9, %v74_v7 }
  0x13   :  { %v86_v12 = vmul.f32 %v353_v11, %v74_v7  ;;  %v90_v15 = vmul.f32 %v353_v11, %v72_v6  ;;  %v80_v46 = vmul.f32 %v347_v9, %v72_v6  ;;  %v81_v47 = vmul.f32 %v350_v10, %v74_v7 }
  0x14   :  { %v94_v20 = vsub.f32 %v92_v16, %v93_v17  ;;  %v83_v51 = vmul.f32 %v353_v11, %v76_v8 }
  0x15   :  { %v88_v18 = vsub.f32 %v86_v12, %v87_v13  ;;  %v91_v19 = vsub.f32 %v89_v14, %v90_v15  ;;  %v82_v50 = vadd.f32 %v81_v47, %v80_v46 }
  0x16   :  { %v101_v23 = vmul.f32 %v94_v20, %v74_v7  ;;  %v103_v24 = vmul.f32 %v94_v20, %v72_v6  ;;  %v98_v53 = vmul.f32 %v94_v20, %v94_v20 }
  0x17   :  { %v100_v21 = vmul.f32 %v91_v19, %v76_v8  ;;  %v104_v22 = vmul.f32 %v88_v18, %v76_v8  ;;  %v106_v25 = vmul.f32 %v88_v18, %v74_v7  ;;  %v107_v26 = vmul.f32 %v91_v19, %v72_v6 }
  0x18   :  { %v95_v48 = vmul.f32 %v88_v18, %v88_v18  ;;  %v96_v49 = vmul.f32 %v91_v19, %v91_v19  ;;  %v84_v56 = vadd.f32 %v83_v51, %v82_v50 }
  0x19   :  { %v102_v27 = vsub.f32 %v100_v21, %v101_v23  ;;  %v105_v28 = vsub.f32 %v103_v24, %v104_v22  ;;  %v108_v29 = vsub.f32 %v106_v25, %v107_v26 }
  0x1a   :  { %v97_v52 = vadd.f32 %v96_v49, %v95_v48  ;;  %vm85_vm4 = vcmp.lt.f32.partialorder %v84_v56, 0.0 }
  0x1b   :  { %v109_v30 = vmul.f32 %v102_v27, %v102_v27  ;;  %v110_v31 = vmul.f32 %v105_v28, %v105_v28  ;;  %v112_v32 = vmul.f32 %v108_v29, %v108_v29  ;;  %v142_v63 = vmul.f32 %v102_v27, %v347_v9 }
  0x1c   :  { %v99_v57 = vadd.f32 %v98_v53, %v97_v52  ;;  %v144_v0 = vmul.f32 %v105_v28, %v350_v10  ;;  %v146_v2 = vmul.f32 %v108_v29, %v353_v11 }
  0x1d   :  { %v111_v33 = vadd.f32 %v110_v31, %v109_v30 }
  0x1e   :  { %vm148_vm7 = vcmp.lt.f32.partialorder %v99_v57, 1e-12 }
  0x1f   :  { %v113_v34 = vadd.f32 %v112_v32, %v111_v33  ;;  %vm149_vm8 = vmand %vm85_vm4, %vm148_vm7 }
  0x21   :  { %190 = vrsqrt.f32 %v113_v34  ;;  %vm121_vm0 = vcmp.eq.f32.partialorder %v113_v34, inf  ;;  %v124_v41 = vand.u32 2147483648, %v113_v34  ;;  %vm123_vm1 = vcmp.eq.f32.partialorder %v113_v34, 0.0 }
  0x27   :  { %v191_v35 = vpop.eup %190 }
  0x28   :  { %v115_v36 = vmul.f32 %v191_v35, %v113_v34 }
  0x2a   :  { %v116_v37 = vmul.f32 %v191_v35, %v115_v36 }
  0x2c   :  { %v117_v38 = vmul.f32 0.5, %v116_v37 }
  0x2e   :  { %v118_v39 = vsub.f32 1.5, %v117_v38 }
  0x30   :  { %v119_v40 = vmul.f32 %v191_v35, %v118_v39 }
  0x32   :  { %v120_v42 = vmul.f32 %v119_v40, %v113_v34 }
  0x34   :  { %v122_v43 = vsel %vm121_vm0, %v113_v34, %v120_v42 }
  0x35   :  { %v125_v44 = vsel %vm123_vm1, %v124_v41, %v122_v43 }
  0x36   :  { %v126_v45 = vadd.f32 1e-09, %v125_v44 }
  0x38   :  { %192 = vrcp.f32 %v126_v45  ;;  %v138_v58 = vand.u32 2147483648, %v126_v45  ;;  %vm132_vm2 = vweird.f32 %v126_v45  ;;  %v136_v60 = vand.u32 2147483647, %v126_v45 }
  0x3a   :  { %v139_v62 = vor.u32 1.1754944e-38, %v138_v58  ;;  %vm137_vm6 = vcmp.eq.f32.partialorder %v136_v60, 8.507059e+37 }
  0x3e   :  { %v193_v54 = vpop.eup %192 }
  0x3f   :  { %v128_v55 = vmul.f32 %v193_v54, %v126_v45  ;;  %vm133_vm3 = vweird.f32 %v193_v54 }
  0x40   :  { %vm134_vm5 = vmor %vm132_vm2, %vm133_vm3 }
  0x41   :  { %v129_v59 = vsub.f32 1.0, %v128_v55 }
  0x43   :  { %v130_v61 = vmul.f32 %v193_v54, %v129_v59 }
  0x45   :  { %v131_v1 = vadd.f32 %v193_v54, %v130_v61 }
  0x47   :  { %v135_v6 = vsel %vm134_vm5, %v193_v54, %v131_v1 }
  0x48   :  { %v140_v7 = vsel %vm137_vm6, %v139_v62, %v135_v6 }
  0x49   :  { %v143_v8 = vmul.f32 %v142_v63, %v140_v7  ;;  %v145_v12 = vmul.f32 %v144_v0, %v140_v7  ;;  %v147_v13 = vmul.f32 %v146_v2, %v140_v7 }
  0x4b   :  { %v150_v14 = vsel %vm149_vm8, 0.0, %v143_v8  ;;  %v151_v15 = vsel %vm149_vm8, 0.0, %v145_v12  ;;  %v152_v16 = vsel %vm149_vm8, 0.0, %v147_v13 }
  0x4c   :  { %v153_v17 = vsel %vm85_vm4, %v150_v14, %v347_v9  ;;  %v156_v18 = vsel %vm85_vm4, %v151_v15, %v350_v10  ;;  %v160_v19 = vsel %vm85_vm4, %v152_v16, %v353_v11 }
  0x4d   :  { %v154_v20 = vadd.f32 %v153_v17, %v340_v3  ;;  %v157_v21 = vadd.f32 %v156_v18, %v342_v4  ;;  %v161_v22 = vadd.f32 %v160_v19, %v344_v5 }
  0x4f   :  { %155 = vst [vmem:[#allocation8] sm:$0xff] %v154_v20 }
  0x50   :  { %159 = vst [vmem:[#allocation8 + $0x8] sm:$0xff] %v157_v21 }
  0x51   :  { %163 = vst [vmem:[#allocation8 + $0x10] sm:$0xff] %v161_v22 }
  0x52   :  { %176 = dma.vmem_to_hbm [thread:$0]  %s169_s27, 384, %s171_s30, [#allocation4], %s297_s20, %s297_s20, %s298_s21  }
  0x53   :  { %294 = dma.done.wait [#allocation4], 384  }
  0x54   :  { %295 = vsyncadd [#allocation4], 4294966912 }
  0x55   :  { %181 = vsyncpa [#allocation3], 1 }
  0x56   :  { %182 = vsyncpa [#allocation6], 1 }
  0x57   :  { %183 = vsyncpa [#allocation4], 1 }

</bundles_post_ra>
